<compile_context>
chip_gen: v5e
topology: v5e:2x2
jax: 0.10.0
libtpu: 0.0.40
codegen_flags: <defaults>
</compile_context>

<pallas_src>
import jax
import jax.numpy as jnp
from jax.experimental import pallas as pl
from jax.experimental.pallas import tpu as pltpu


def _round_up(x: int, m: int) -> int:
    return (x + m - 1) // m * m


def _round_down(x: int, m: int) -> int:
    return x // m * m


def _tpu_generation() -> int:
    """Best-effort TPU generation from device_kind; defaults to 6."""
    try:
        kind = jax.devices()[0].device_kind.lower()
    except Exception:
        return 6
    for g in (7, 6, 5, 4, 3):
        if f"v{g}" in kind or f"tpu{g}" in kind:
            return g
    return 6


def rope_kernel(x_ref, cos_ref, sin_next_ref, sin_prev_ref, o_ref):
    x = x_ref[...]                                  # (ts, tile_be)
    w = x.shape[-1]
    # Pair swap via lane rolls.  Chunk boundaries always fall on an even lane
    # (tile_be is a multiple of 128 or the full even BE), so the wraparound
    # lanes are multiplied by exact-zero entries of the corresponding sin
    # table and never contribute.
    x_next = pltpu.roll(x, shift=w - 1, axis=1)     # y[f] = x[(f + 1) % w]
    x_prev = pltpu.roll(x, shift=1, axis=1)         # y[f] = x[(f - 1) % w]
    out = (x * cos_ref[...]
           + x_next * sin_next_ref[...]
           + x_prev * sin_prev_ref[...])
    o_ref[...] = out.astype(o_ref.dtype)


def rope_forward(x, inv_freq, *, target_block_bytes=None):
    S, B, E = x.shape
    if B != S:
        raise ValueError(
            "The torch module's broadcast only works for batch == seq_len "
            f"(got seq_len={S}, batch={B}).")
    assert E % 2 == 0
    BE = B * E

    gen = _tpu_generation()
    if target_block_bytes is None:
        # Pure HBM streaming: size blocks so ~0.35us/step overhead is small
        # against each generation's HBM bandwidth.
        target_block_bytes = {7: 6 << 20, 6: 3 << 20}.get(gen, 2 << 20)

    itemsize = jnp.dtype(x.dtype).itemsize
    # Sub-32-bit dtypes pack along sublanes: one full vreg tile is 8 rows for
    # 32-bit, 16 for 16-bit, 32 for 8-bit.
    sub_mult = max(8, 32 // itemsize)

    # --- hoisted angle tables (angle indexed by the batch index, see note) ---
    b_idx = jnp.arange(B, dtype=jnp.float32)[:, None]             # (B, 1)
    inv2 = jnp.repeat(inv_freq.astype(jnp.float32), 2)[None, :]   # (1, E)
    theta = b_idx * inv2                                          # (B, E)
    cos_t = jnp.cos(theta)
    sin_t = jnp.sin(theta)
    even = (jnp.arange(E) % 2 == 0)[None, :]                      # (1, E)
    # even lane 2k:   out = x[2k]  *cos - x[2k+1]*sin   -> uses x_next
    # odd  lane 2k+1: out = x[2k+1]*cos + x[2k]  *sin   -> uses x_prev
    cos_tab = cos_t.reshape(1, BE)
    sin_next_tab = jnp.where(even, -sin_t, 0.0).reshape(1, BE)
    sin_prev_tab = jnp.where(even, 0.0, sin_t).reshape(1, BE)

    # bf16 tables on v6e/v7x with bf16 inputs (bf16 VALU); f32 on v5e.
    table_dtype = jnp.float32
    if x.dtype == jnp.bfloat16 and gen >= 6:
        table_dtype = jnp.bfloat16
    cos_tab = cos_tab.astype(table_dtype)
    sin_next_tab = sin_next_tab.astype(table_dtype)
    sin_prev_tab = sin_prev_tab.astype(table_dtype)
    tab_itemsize = jnp.dtype(table_dtype).itemsize

    # --- lane-dense flattening, padded to a multiple of 128 lanes ------------
    x2 = x.reshape(S, BE)
    BE_pad = _round_up(BE, 128)
    if BE_pad != BE:
        pad = BE_pad - BE
        x2 = jnp.pad(x2, ((0, 0), (0, pad)))
        cos_tab = jnp.pad(cos_tab, ((0, 0), (0, pad)))
        sin_next_tab = jnp.pad(sin_next_tab, ((0, 0), (0, pad)))
        sin_prev_tab = jnp.pad(sin_prev_tab, ((0, 0), (0, pad)))

    # --- generation-aware tiling ----------------------------------------------
    row_bytes = BE_pad * itemsize
    if sub_mult * row_bytes <= target_block_bytes:
        # Full-width blocks; pick as many sublane tiles of rows as fit.
        tile_be = BE_pad
        rows = max(sub_mult,
                   _round_down(target_block_bytes // row_bytes, sub_mult))
    else:
        # A single sublane-tile-high slab of full width exceeds the budget
        # (huge B*E): tile the BE axis in 128-lane multiples.  Even chunk
        # widths keep the (2k, 2k+1) pairs intact within each chunk.
        rows = sub_mult
        tile_be = max(128, _round_down(
            target_block_bytes // (sub_mult * itemsize), 128))
        tile_be = min(tile_be, BE_pad)
    n_be = pl.cdiv(BE_pad, tile_be)

    # v7x has 2 TensorCores sharing the "parallel" grid; make sure there are
    # enough steps for both to get work.
    if gen >= 7:
        wanted_n_s = max(1, pl.cdiv(4, n_be))
        if wanted_n_s > 1:
            cap = max(sub_mult, _round_down(S // wanted_n_s, sub_mult))
            rows = min(rows, cap)

    ts = S if rows >= S else rows              # full-dim block is always legal
    n_s = pl.cdiv(S, ts)
    grid = (n_be, n_s)                         # BE outer: tables re-fetch only
                                               # when the BE chunk changes.

    # Double-buffered in+out blocks plus the (VMEM-resident) tables + slack.
    block_bytes = ts * tile_be * itemsize
    table_bytes = 3 * 2 * tile_be * tab_itemsize
    vmem_needed = 4 * block_bytes + table_bytes + (1 << 20)
    vmem_limit = int(min(max(vmem_needed, 32 << 20), 48 << 20))

    cost = pl.CostEstimate(
        flops=5 * S * BE_pad,                  # 3 mul + 2 add per element
        transcendentals=0,                     # hoisted into the wrapper
        bytes_accessed=2 * S * BE_pad * itemsize + 3 * BE_pad * tab_itemsize,
    )

    out = pl.pallas_call(
        rope_kernel,
        out_shape=jax.ShapeDtypeStruct((S, BE_pad), x.dtype),
        grid=grid,
        in_specs=[
            pl.BlockSpec((ts, tile_be), lambda j, i: (i, j)),
            pl.BlockSpec((1, tile_be), lambda j, i: (0, j)),   # VMEM-resident
            pl.BlockSpec((1, tile_be), lambda j, i: (0, j)),
            pl.BlockSpec((1, tile_be), lambda j, i: (0, j)),
        ],
        out_specs=pl.BlockSpec((ts, tile_be), lambda j, i: (i, j)),
        compiler_params=pltpu.CompilerParams(
            dimension_semantics=("parallel", "parallel"),
            vmem_limit_bytes=vmem_limit),
        cost_estimate=cost,
    )(x2, cos_tab, sin_next_tab, sin_prev_tab)

    if BE_pad != BE:
        out = out[:, :BE]
    return out.reshape(S, B, E)


def rope_reference(x, inv_freq):
    # Line-by-line port of the torch forward (same broadcasting semantics).
    S, B, E = x.shape
    t = jnp.arange(S, dtype=jnp.float32)
    sinusoid_inp = jnp.einsum("i,j->ij", t, inv_freq)
    sin_inp = jnp.sin(sinusoid_inp)
    cos_inp = jnp.cos(sinusoid_inp)
    q = x.reshape(S, B, E // 2, 2)
    q_rot = jnp.stack((-q[..., 1], q[..., 0]), axis=-1)
    q_t = q * cos_inp[..., None] + q_rot * sin_inp[..., None]
    return q_t.reshape(S, B, E)


def _make_inv_freq(dim):
    # Deterministic "parameter" from __init__: inv_freq of shape (dim//2,).
    return 1.0 / (10000.0 ** (jnp.arange(0, dim, 2, dtype=jnp.float32) / dim))


if __name__ == "__main__":
    key = jax.random.PRNGKey(0)
    # batch must equal seq_len for the original torch broadcast to be valid.
    cases = [
        (8, 32),    # aligned: B*E = 256 (multiple of 128)
        (12, 32),   # seq not a multiple of 8 -> partial / full-dim S blocks
        (8, 30),    # B*E = 240 -> lane-padded to 256
    ]
    for seq_len, dim in cases:
        batch = seq_len
        key, sub = jax.random.split(key)
        x = jax.random.normal(sub, (seq_len, batch, dim), dtype=jnp.float32)
        inv_freq = _make_inv_freq(dim)

        out = jax.block_until_ready(rope_forward(x, inv_freq))
        ref = rope_reference(x, inv_freq)

        assert out.shape == (seq_len, batch, dim)
        assert jnp.allclose(out, ref, atol=1e-5, rtol=1e-5), (seq_len, dim)
    print("KERNEL_OK")
</pallas_src>

<mosaic_0001>
module attributes {stable_mosaic.version = 11 : i64} {
  func.func @rope_kernel(%arg0: i32, %arg1: i32, %arg2: memref<8x256xf32, #tpu.memory_space<vmem>>, %arg3: memref<1x256xf32, #tpu.memory_space<vmem>>, %arg4: memref<1x256xf32, #tpu.memory_space<vmem>>, %arg5: memref<1x256xf32, #tpu.memory_space<vmem>>, %arg6: memref<8x256xf32, #tpu.memory_space<vmem>>) attributes {dimension_semantics = [#tpu.dimension_semantics<parallel>, #tpu.dimension_semantics<parallel>], iteration_bounds = array<i64: 1, 1>, scalar_prefetch = 0 : i64, scratch_operands = 0 : i64, tpu.core_type = #tpu.core_type<tc>, window_params = [{transform_indices = @transform_0, window_bounds = array<i64: 8, 256>}, {transform_indices = @transform_1, window_bounds = array<i64: 1, 256>}, {transform_indices = @transform_2, window_bounds = array<i64: 1, 256>}, {transform_indices = @transform_3, window_bounds = array<i64: 1, 256>}, {transform_indices = @transform_4, window_bounds = array<i64: 8, 256>}]} {
    %c0 = arith.constant 0 : index
    %c0_0 = arith.constant 0 : index
    %0 = vector.load %arg2[%c0, %c0_0] : memref<8x256xf32, #tpu.memory_space<vmem>>, vector<8x256xf32>
    %c255_i32 = arith.constant 255 : i32
    %1 = tpu.dynamic_rotate %0 by %c255_i32 dim 1 : vector<8x256xf32>, i32 -> vector<8x256xf32>
    %c1_i32 = arith.constant 1 : i32
    %2 = tpu.dynamic_rotate %0 by %c1_i32 dim 1 : vector<8x256xf32>, i32 -> vector<8x256xf32>
    %c0_1 = arith.constant 0 : index
    %c0_2 = arith.constant 0 : index
    %3 = vector.load %arg3[%c0_1, %c0_2] : memref<1x256xf32, #tpu.memory_space<vmem>>, vector<1x256xf32>
    %4 = vector.broadcast %3 : vector<1x256xf32> to vector<8x256xf32>
    %5 = arith.mulf %0, %4 : vector<8x256xf32>
    %c0_3 = arith.constant 0 : index
    %c0_4 = arith.constant 0 : index
    %6 = vector.load %arg4[%c0_3, %c0_4] : memref<1x256xf32, #tpu.memory_space<vmem>>, vector<1x256xf32>
    %7 = vector.broadcast %6 : vector<1x256xf32> to vector<8x256xf32>
    %8 = arith.mulf %1, %7 : vector<8x256xf32>
    %9 = arith.addf %5, %8 : vector<8x256xf32>
    %c0_5 = arith.constant 0 : index
    %c0_6 = arith.constant 0 : index
    %10 = vector.load %arg5[%c0_5, %c0_6] : memref<1x256xf32, #tpu.memory_space<vmem>>, vector<1x256xf32>
    %11 = vector.broadcast %10 : vector<1x256xf32> to vector<8x256xf32>
    %12 = arith.mulf %2, %11 : vector<8x256xf32>
    %13 = arith.addf %9, %12 : vector<8x256xf32>
    %c0_7 = arith.constant 0 : index
    %c0_8 = arith.constant 0 : index
    %14 = vector.load %arg6[%c0_7, %c0_8] : memref<8x256xf32, #tpu.memory_space<vmem>>, vector<8x256xf32>
    tpu.vector_store %arg6[%c0_7, %c0_8], %13 {strides = array<i32>} : memref<8x256xf32, #tpu.memory_space<vmem>>, vector<8x256xf32>,
    return
  }
  func.func @transform_0(%arg0: i32, %arg1: i32) -> (i32, i32) {
    %c0_i32 = arith.constant 0 : i32
    return %arg1, %arg0 : i32, i32
  }
  func.func @transform_1(%arg0: i32, %arg1: i32) -> (i32, i32) {
    %c0_i32 = arith.constant 0 : i32
    %c0_i32_0 = arith.constant 0 : i32
    return %c0_i32, %arg0 : i32, i32
  }
  func.func @transform_2(%arg0: i32, %arg1: i32) -> (i32, i32) {
    %c0_i32 = arith.constant 0 : i32
    %c0_i32_0 = arith.constant 0 : i32
    return %c0_i32, %arg0 : i32, i32
  }
  func.func @transform_3(%arg0: i32, %arg1: i32) -> (i32, i32) {
    %c0_i32 = arith.constant 0 : i32
    %c0_i32_0 = arith.constant 0 : i32
    return %c0_i32, %arg0 : i32, i32
  }
  func.func @transform_4(%arg0: i32, %arg1: i32) -> (i32, i32) {
    %c0_i32 = arith.constant 0 : i32
    return %arg1, %arg0 : i32, i32
  }
}

</mosaic_0001>

<bundles_post_ra>
// kernel: tpu_custom_call.1
= control target key start
LH: loop header
LB: loop body
LE: loop exit
PB: predicated region body
PF: predicated region fallthrough
CT: control target
= control target key end

     0   :  { %9 = vsyncpa [#allocation3], 0  ;;  %s279_s0 = inlined_call_operand.hbm [shape: f32[8,256], index: 0, kind: input, shape index: {}]   ;;  %s280_s1 = inlined_call_operand.hbm [shape: f32[1,256], index: 1, kind: input, shape index: {}]   ;;  %s281_s2 = inlined_call_operand.hbm [shape: f32[1,256], index: 2, kind: input, shape index: {}]   ;;  %s282_s3 = inlined_call_operand.vmem [shape: f32[1,256], index: 3, kind: input, shape index: {}]   ;;  %s283_s4 = inlined_call_operand.hbm [shape: f32[8,256], index: 4, kind: output, shape index: {}]  }
   0x1   :  { %10 = vsyncpa [#allocation6], 0  ;;  %s28_s17 = sshll.u32 %s280_s1, 4  ;;  %s29_s17 = int_to_ptr.hbm [resolvable:$true] %s28_s17 }
   0x2   :  { %11 = vsyncpa [#allocation4], 0  ;;  %s233_s18 = smov [#allocation5]   ;;  %s17_s22 = sshll.u32 %s279_s0, 4  ;;  %s18_s22 = int_to_ptr.hbm [resolvable:$true] %s17_s22 }
   0x3   :  { %s30_s19 = sshll.u32 %s233_s18, 4  ;;  %s234_s23 = smov [#allocation2]   ;;  %s31_s19 = int_to_ptr.vmem [resolvable:$true] %s30_s19 }
   0x4   :  { %33 = dma.hbm_to_vmem [thread:$0]  %s29_s17, 32, %s31_s19, [#allocation6]  }
   0x5   :  { %s19_s24 = sshll.u32 %s234_s23, 4  ;;  %s39_s27 = sshll.u32 %s281_s2, 4  ;;  %s20_s24 = int_to_ptr.vmem [resolvable:$true] %s19_s24  ;;  %s40_s27 = int_to_ptr.hbm [resolvable:$true] %s39_s27 }
   0x6   :  { %22 = dma.hbm_to_vmem [thread:$0]  %s18_s22, 256, %s20_s24, [#allocation3]  }
   0x7   :  { %s235_s1 = smov [#allocation7]  }
   0x8   :  { %s41_s28 = sshll.u32 %s235_s1, 4  ;;  %s42_s28 = int_to_ptr.vmem [resolvable:$true] %s41_s28 }
   0x9   :  { %44 = dma.hbm_to_vmem [thread:$0]  %s40_s27, 32, %s42_s28, [#allocation6]  }
   0xa   :  { %227 = dma.done.wait [#allocation3], 256  }
   0xb   :  { %228 = vsyncadd [#allocation3], 4294967040 }
   0xc   :  { %229 = dma.done.wait [#allocation6], 64  }
   0xd   :  { %230 = vsyncadd [#allocation6], 4294967232  ;;  %v59_v0 = vld [vmem:[#allocation2] sm:$0xff]  ;;  %s236_s0 = smov 1   ;;  %s237_s29 = smov 127   ;;  %v60_v1 = vld [vmem:[#allocation2 + $0x8] sm:$0xff]  ;;  %v65_v2 = vlaneseq }
   0xe   :  { %70 = vrot.lane.b32.xlu1 %v59_v0, %s236_s0  ;;  %61 = vrot.lane.b32.xlu0 %v59_v0, %s237_s29  ;;  %v77_v5 = vld [vmem:[#allocation5] sm:$0x3]  ;;  %v85_v7 = vld [vmem:[#allocation7] sm:$0x3]  ;;  %v95_v10 = vld [vmem:[%s282_s3] sm:$0x3] }
   0xf   :  { %v66_v6 = vand.u32 127, %v65_v2  ;;  %v79_v8 = vperm.slane %v77_v5, 0  ;;  %v80_v9 = vperm.slane %v77_v5, 1  ;;  %v87_v11 = vperm.slane %v85_v7, 0  ;;  %s238_s3 = smov [#allocation8]   ;;  %s114_s8 = sshll.u32 %s283_s4, 4  ;;  %s115_s8 = int_to_ptr.hbm [resolvable:$true] %s114_s8 }
  0x10   :  { %v88_v12 = vperm.slane %v85_v7, 1  ;;  %v97_v15 = vperm.slane %v95_v10, 0  ;;  %v98_v16 = vperm.slane %v95_v10, 1  ;;  %s112_s5 = sshll.u32 %s238_s3, 4  ;;  %s113_s5 = int_to_ptr.vmem [resolvable:$true] %s112_s5 }
  0x11   :  { %vm74_vm0 = vcmp.lt.s32.totalorder %v66_v6, 1  ;;  %vm67_vm1 = vcmp.lt.s32.totalorder %v66_v6, 127  ;;  %v83_v13 = vmul.f32 %v79_v8, %v59_v0  ;;  %v84_v14 = vmul.f32 %v80_v9, %v60_v1 }
  0x16   :  { %72 = vrot.lane.b32.xlu1 %v60_v1, %s236_s0  ;;  %63 = vrot.lane.b32.xlu0 %v60_v1, %s237_s29 }
  0x80   :  { %v71_v3 = vpop.permute.xlu1 %70  ;;  %v62_v4 = vpop.permute.xlu0 %61 }
  0x88   :  { %v73_v17 = vpop.permute.xlu1 %72  ;;  %v64_v18 = vpop.permute.xlu0 %63 }
  0x89   :  { %v75_v19 = vsel %vm74_vm0, %v71_v3, %v73_v17  ;;  %v76_v20 = vsel %vm74_vm0, %v73_v17, %v71_v3  ;;  %v68_v21 = vsel %vm67_vm1, %v62_v4, %v64_v18  ;;  %v69_v22 = vsel %vm67_vm1, %v64_v18, %v62_v4 }
  0x8a   :  { %v91_v23 = vmul.f32 %v87_v11, %v68_v21  ;;  %v92_v24 = vmul.f32 %v88_v12, %v69_v22  ;;  %v101_v25 = vmul.f32 %v97_v15, %v76_v20  ;;  %v102_v26 = vmul.f32 %v98_v16, %v75_v19 }
  0x8c   :  { %v93_v27 = vadd.f32 %v91_v23, %v83_v13  ;;  %v94_v28 = vadd.f32 %v92_v24, %v84_v14 }
  0x8e   :  { %v103_v29 = vadd.f32 %v101_v25, %v93_v27  ;;  %v104_v30 = vadd.f32 %v102_v26, %v94_v28 }
  0x90   :  { %105 = vst [vmem:[#allocation8] sm:$0xff] %v103_v29 }
  0x91   :  { %106 = vst [vmem:[#allocation8 + $0x8] sm:$0xff] %v104_v30 }
  0x92   :  { %117 = dma.vmem_to_hbm [thread:$0]  %s113_s5, 256, %s115_s8, [#allocation4]  }
  0x93   :  { %231 = dma.done.wait [#allocation4], 256  }
  0x94   :  { %232 = vsyncadd [#allocation4], 4294967040 }
  0x95   :  { %122 = vsyncpa [#allocation3], 1 }
  0x96   :  { %123 = vsyncpa [#allocation6], 1 }
  0x97   :  { %124 = vsyncpa [#allocation4], 1 }

</bundles_post_ra>
